<compile_context>
chip_gen: v7x
topology: tpu7x:2x2x1
jax: 0.10.0
libtpu: 0.0.40
codegen_flags: <defaults>
</compile_context>

<pallas_src>
import jax
import jax.numpy as jnp
from jax.experimental import pallas as pl
from jax.experimental.pallas import tpu as pltpu


# ----------------------------------------------------------------------------------
# Tiling helpers
# ----------------------------------------------------------------------------------
def _round_up(a, m):
    return (a + m - 1) // m * m


def _pick_tile(dim, granule, cap):
    """Choose (tile, padded_dim) for one axis.

    If `dim` fits under `cap`, use the full dim as the block (Mosaic allows
    block == array dim regardless of (8,128) granularity) -> zero padding.
    Otherwise search multiples of `granule` in [cap/2, cap] and pick the one that
    minimises the padded total (keeps tiles large, avoids 2x padding waste on
    awkward shapes).
    """
    if dim <= cap:
        return dim, dim
    cap = max(granule, cap - cap % granule)
    best_t, best_pad = cap, _round_up(dim, cap)
    lo = max(granule, cap // 2)
    t = cap - granule
    while t >= lo:
        padded = _round_up(dim, t)
        if padded < best_pad:
            best_pad, best_t = padded, t
        t -= granule
    return best_t, best_pad


def _make_plan(output_size, input_size, in_elt):
    """Pick (to, Op, tk, Ip, cap_tn) for a given weight shape / compute element size."""
    # Sublane granule is dtype dependent: f32 -> 8, bf16 -> 16, int8/fp8 -> 32.
    g_sub = max(8, 32 // in_elt)
    if in_elt <= 2:                     # bf16 (or narrower) compute
        cap_to, cap_tn, cap_tk = 1024, 1024, 1024
    else:                               # f32 compute
        cap_to, cap_tn, cap_tk = 512, 512, 1024
    to, op = _pick_tile(output_size, g_sub, cap_to)
    tk, ip = _pick_tile(input_size, 128, cap_tk)
    return to, op, tk, ip, cap_tn


# ----------------------------------------------------------------------------------
# Kernel
# ----------------------------------------------------------------------------------
def _linear_kernel(w_ref, x_ref, b_ref, o_ref):
    # Grid = (O//to, N//tn, I//tk); the reduction axis k is last.
    # The output block index is constant over k, so o_ref stays resident in VMEM and
    # doubles as the f32 accumulator (no separate scratch needed).
    k = pl.program_id(2)

    @pl.when(k == 0)
    def _():
        # Fold the bias into the accumulator init.
        o_ref[...] = jnp.broadcast_to(b_ref[...].astype(jnp.float32), o_ref.shape)

    o_ref[...] += jnp.dot(w_ref[...], x_ref[...], preferred_element_type=jnp.float32)


def _linear_pallas(w_pad, x_pad, b_pad, to, tn, tk):
    """Launch the tiled kernel on already-padded operands. Returns f32 (Op, Np)."""
    op, ip = w_pad.shape
    ip2, np_ = x_pad.shape
    assert ip == ip2
    grid = (op // to, np_ // tn, ip // tk)
    gi, gj, gk = grid

    w_elt = jnp.dtype(w_pad.dtype).itemsize
    x_elt = jnp.dtype(x_pad.dtype).itemsize

    # Advisory cost estimate, counting the W / x re-reads implied by the grid.
    cost = pl.CostEstimate(
        flops=2 * op * np_ * ip,
        transcendentals=0,
        bytes_accessed=int(gj * op * ip * w_elt        # W re-read once per N-block
                           + gi * ip * np_ * x_elt     # x re-read once per O-block
                           + gj * op * 4               # bias
                           + op * np_ * 4),            # output written once
    )

    # Double-buffered pipeline footprint: W + x input tiles, bias, output/acc tile.
    footprint = 2 * ((to * tk + tk * tn) * w_elt + to * 4) + 2 * to * tn * 4
    vmem_limit = int(min(max(2 * footprint, 24 * 1024 * 1024), 48 * 1024 * 1024))

    return pl.pallas_call(
        _linear_kernel,
        out_shape=jax.ShapeDtypeStruct((op, np_), jnp.float32),
        grid_spec=pltpu.PrefetchScalarGridSpec(
            num_scalar_prefetch=0,
            grid=grid,
            in_specs=[
                pl.BlockSpec((to, tk), lambda i, j, k: (i, k)),   # W tile
                pl.BlockSpec((tk, tn), lambda i, j, k: (k, j)),   # x tile
                pl.BlockSpec((to, 1), lambda i, j, k: (i, 0)),    # bias column tile
            ],
            out_specs=pl.BlockSpec((to, tn), lambda i, j, k: (i, j)),
        ),
        compiler_params=pltpu.CompilerParams(
            dimension_semantics=("parallel", "parallel", "arbitrary"),
            vmem_limit_bytes=vmem_limit,
        ),
        cost_estimate=cost,
    )(w_pad, x_pad, b_pad)


# ----------------------------------------------------------------------------------
# Functional wrapper (prepares operands per call; prefer the Linear class which caches)
# ----------------------------------------------------------------------------------
def linear_forward(W, x, b=None, *, compute_dtype=None):
    """out = W @ x + b  with W:(O,I), x:(I,N), b:(O,1) -> (O,N) float32."""
    O, I = W.shape
    I2, N = x.shape
    assert I == I2, "input_size mismatch"
    if b is None:
        b = jnp.zeros((O, 1), jnp.float32)
    assert b.shape == (O, 1)

    if compute_dtype is not None:
        W = W.astype(compute_dtype)
        x = x.astype(compute_dtype)
    in_elt = jnp.dtype(W.dtype).itemsize

    to, Op, tk, Ip, cap_tn = _make_plan(O, I, in_elt)
    tn, Np = _pick_tile(N, 128, cap_tn)

    w_pad = W if (Op, Ip) == (O, I) else jnp.pad(W, ((0, Op - O), (0, Ip - I)))
    b_pad = b.astype(jnp.float32)
    if Op != O:
        b_pad = jnp.pad(b_pad, ((0, Op - O), (0, 0)))
    x_pad = x if (Ip, Np) == (I, N) else jnp.pad(x, ((0, Ip - I), (0, Np - N)))

    out = _linear_pallas(w_pad, x_pad, b_pad, to, tn, tk)
    if (Op, Np) != (O, N):
        out = out[:O, :N]
    return out


# ----------------------------------------------------------------------------------
# Module mirror of the PyTorch `Linear` (forward, cbon=False digital path)
# ----------------------------------------------------------------------------------
class Linear:
    def __init__(self, input_size, output_size, key, bias=False, compute_dtype=None):
        kw, kb = jax.random.split(key)
        # torch.rand -> uniform [0, 1)
        self.W = jax.random.uniform(kw, (output_size, input_size), dtype=jnp.float32)
        if bias:
            self.b = jax.random.uniform(kb, (output_size, 1), dtype=jnp.float32)
        else:
            self.b = jnp.zeros((output_size, 1), dtype=jnp.float32)

        self.input_size, self.output_size = input_size, output_size
        self.compute_dtype = compute_dtype   # e.g. jnp.bfloat16 on v6e/v7x (f32 accum)
        # TODO(synk): int8 (v5e/v6e) / fp8 (v7x) weight quantization for the small-N
        # weight-streaming regime is not implemented; bf16 via compute_dtype only.
        # TODO(synk): crossbar ticket / `cb.register_linear` analog-hardware (cbon=True)
        # path and the custom autograd backward have no Pallas equivalent here.

        w_c = self.W if compute_dtype is None else self.W.astype(compute_dtype)
        in_elt = jnp.dtype(w_c.dtype).itemsize
        self._to, self._Op, self._tk, self._Ip, self._cap_tn = _make_plan(
            output_size, input_size, in_elt)

        # Cache the casted + padded weight / bias ONCE (no per-call W cast/pad pass).
        if (self._Op, self._Ip) != (output_size, input_size):
            w_c = jnp.pad(w_c, ((0, self._Op - output_size), (0, self._Ip - input_size)))
        self.Wp = w_c
        b_pad = self.b.astype(jnp.float32)
        if self._Op != output_size:
            b_pad = jnp.pad(b_pad, ((0, self._Op - output_size), (0, 0)))
        self.bp = b_pad

    def __call__(self, x):
        # x: (input_size, N) -> (output_size, N), matching W.matmul(x) + b.
        I, N = x.shape
        assert I == self.input_size, "input_size mismatch"
        xc = x if self.compute_dtype is None else x.astype(self.compute_dtype)
        tn, Np = _pick_tile(N, 128, self._cap_tn)
        if (self._Ip, Np) != (I, N):
            xc = jnp.pad(xc, ((0, self._Ip - I), (0, Np - N)))
        out = _linear_pallas(self.Wp, xc, self.bp, self._to, tn, self._tk)
        if (self._Op, Np) != (self.output_size, N):
            out = out[: self.output_size, :N]
        return out


# ----------------------------------------------------------------------------------
if __name__ == "__main__":
    key = jax.random.PRNGKey(0)
    k_mod, k_x, k_w2, k_b2, k_x2 = jax.random.split(key, 5)

    # 1) Small demo matching the module convention: x is (input_size, N) columns.
    input_size, output_size, batch_cols = 32, 16, 8
    mod = Linear(input_size, output_size, k_mod, bias=True)
    x = jax.random.uniform(k_x, (input_size, batch_cols), dtype=jnp.float32)

    out = mod(x)
    jax.block_until_ready(out)
    ref = mod.W @ x + mod.b
    assert out.shape == (output_size, batch_cols)
    assert jnp.allclose(out, ref, atol=1e-4, rtol=1e-5)

    # 2) Tiled multi-block grid with padding + output slice (O > to cap, I > tk cap).
    O2, I2, N2 = 650, 1280, 160
    W2 = jax.random.uniform(k_w2, (O2, I2), dtype=jnp.float32)
    b2 = jax.random.uniform(k_b2, (O2, 1), dtype=jnp.float32)
    x2 = jax.random.uniform(k_x2, (I2, N2), dtype=jnp.float32)
    out2 = linear_forward(W2, x2, b2)
    jax.block_until_ready(out2)
    ref2 = W2 @ x2 + b2
    assert out2.shape == (O2, N2)
    assert jnp.allclose(out2, ref2, atol=1e-3, rtol=1e-4)

    print("KERNEL_OK")
</pallas_src>

<mosaic_0001>
module attributes {stable_mosaic.version = 11 : i64} {
  func.func @_linear_kernel(%arg0: i32, %arg1: i32, %arg2: i32, %arg3: memref<16x32xf32, #tpu.memory_space<vmem>>, %arg4: memref<32x8xf32, #tpu.memory_space<vmem>>, %arg5: memref<16x1xf32, #tpu.memory_space<vmem>>, %arg6: memref<16x8xf32, #tpu.memory_space<vmem>>) attributes {dimension_semantics = [#tpu.dimension_semantics<parallel>, #tpu.dimension_semantics<parallel>, #tpu.dimension_semantics<arbitrary>], iteration_bounds = array<i64: 1, 1, 1>, scalar_prefetch = 0 : i64, scratch_operands = 0 : i64, tpu.core_type = #tpu.core_type<tc>, window_params = [{transform_indices = @transform_0, window_bounds = array<i64: 16, 32>}, {transform_indices = @transform_1, window_bounds = array<i64: 32, 8>}, {transform_indices = @transform_2, window_bounds = array<i64: 16, 1>}, {transform_indices = @transform_3, window_bounds = array<i64: 16, 8>}]} {
    %c0_i32 = arith.constant 0 : i32
    %0 = arith.cmpi eq, %arg2, %c0_i32 : i32
    %1 = arith.extui %0 : i1 to i32
    %c0_i32_0 = arith.constant 0 : i32
    %2 = arith.cmpi ne, %1, %c0_i32_0 : i32
    scf.if %2 {
      %c0_8 = arith.constant 0 : index
      %c0_9 = arith.constant 0 : index
      %9 = vector.load %arg5[%c0_8, %c0_9] : memref<16x1xf32, #tpu.memory_space<vmem>>, vector<16x1xf32>
      %10 = vector.shape_cast %9 : vector<16x1xf32> to vector<16x1xf32>
      %11 = vector.broadcast %10 : vector<16x1xf32> to vector<16x8xf32>
      %c0_10 = arith.constant 0 : index
      %c0_11 = arith.constant 0 : index
      %12 = vector.load %arg6[%c0_10, %c0_11] : memref<16x8xf32, #tpu.memory_space<vmem>>, vector<16x8xf32>
      tpu.vector_store %arg6[%c0_10, %c0_11], %11 {strides = array<i32>} : memref<16x8xf32, #tpu.memory_space<vmem>>, vector<16x8xf32>,
    } else {
    }
    %c0 = arith.constant 0 : index
    %c0_1 = arith.constant 0 : index
    %3 = vector.load %arg6[%c0, %c0_1] : memref<16x8xf32, #tpu.memory_space<vmem>>, vector<16x8xf32>
    %c0_2 = arith.constant 0 : index
    %c0_3 = arith.constant 0 : index
    %4 = vector.load %arg3[%c0_2, %c0_3] : memref<16x32xf32, #tpu.memory_space<vmem>>, vector<16x32xf32>
    %c0_4 = arith.constant 0 : index
    %c0_5 = arith.constant 0 : index
    %5 = vector.load %arg4[%c0_4, %c0_5] : memref<32x8xf32, #tpu.memory_space<vmem>>, vector<32x8xf32>
    %cst = arith.constant dense<0.000000e+00> : vector<16x8xf32>
    %6 = tpu.matmul %4, %5, %cst {dimension_numbers = #tpu.dot_dimension_numbers<[1], [0], [0], [1], [0, 0, 1, 1], [], []>} : vector<16x32xf32>, vector<32x8xf32>, vector<16x8xf32> -> vector<16x8xf32>
    %7 = arith.addf %3, %6 : vector<16x8xf32>
    %c0_6 = arith.constant 0 : index
    %c0_7 = arith.constant 0 : index
    %8 = vector.load %arg6[%c0_6, %c0_7] : memref<16x8xf32, #tpu.memory_space<vmem>>, vector<16x8xf32>
    tpu.vector_store %arg6[%c0_6, %c0_7], %7 {strides = array<i32>} : memref<16x8xf32, #tpu.memory_space<vmem>>, vector<16x8xf32>,
    return
  }
  func.func @transform_0(%arg0: i32, %arg1: i32, %arg2: i32) -> (i32, i32) {
    %c0_i32 = arith.constant 0 : i32
    return %arg0, %arg2 : i32, i32
  }
  func.func @transform_1(%arg0: i32, %arg1: i32, %arg2: i32) -> (i32, i32) {
    %c0_i32 = arith.constant 0 : i32
    return %arg2, %arg1 : i32, i32
  }
  func.func @transform_2(%arg0: i32, %arg1: i32, %arg2: i32) -> (i32, i32) {
    %c0_i32 = arith.constant 0 : i32
    %c0_i32_0 = arith.constant 0 : i32
    return %arg0, %c0_i32 : i32, i32
  }
  func.func @transform_3(%arg0: i32, %arg1: i32, %arg2: i32) -> (i32, i32) {
    %c0_i32 = arith.constant 0 : i32
    return %arg0, %arg1 : i32, i32
  }
}

</mosaic_0001>

<bundles_post_ra>
// kernel: tpu_custom_call.1
= control target key start
LH: loop header
LB: loop body
LE: loop exit
PB: predicated region body
PF: predicated region fallthrough
CT: control target
= control target key end

     0   :  { %vm41_vm0 = vcmask 261120   ;;  %v161_v3 = vmov 0   ;;  %vm30_vm1 = vcmask 64512   ;;  %s226_s1 = inlined_call_operand.vmem [shape: f32[32,8], index: 1, kind: input, shape index: {}]   ;;  %s227_s0 = inlined_call_operand.vmem [shape: f32[16,32], index: 0, kind: input, shape index: {}]   ;;  %s228_s2 = inlined_call_operand.vmem [shape: f32[16,1], index: 2, kind: input, shape index: {}]   ;;  %s229_s3 = inlined_call_operand.vmem [shape: f32[16,8], index: 3, kind: output, shape index: {}]  }
   0x1   :  { %v37_v0 = vld [vmem:[%s226_s1] sm:$0xff]  ;;  %v38_v1 = vld [vmem:[%s226_s1 + $0x8] sm:$0xff]  ;;  %v39_v2 = vld [vmem:[%s226_s1 + $0x10] sm:$0xff]  ;;  %160 = vset.pattern.permute.xlu0 %v161_v3 }
   0x2   :  { %v151_v4 = vpack.c.bf16 %v38_v1, %v37_v0  ;;  %v40_v5 = vld [vmem:[%s226_s1 + $0x18] sm:$0xff]  ;;  %v35_v6 = vld [vmem:[%s227_s0] sm:$0xff]  ;;  %v19_v9 = vld [vmem:[%s228_s2 + $0x8] sm:$0xff] }
   0x3   :  { %v155_v7 = vpack.c.bf16 %v40_v5, %v39_v2  ;;  %148 = vmatprep.mubr.msk.f32.mxu0 %vm41_vm0, %v35_v6  ;;  %v18_v8 = vld [vmem:[%s228_s2] sm:$0xff]  ;;  %v36_v10 = vld [vmem:[%s227_s0 + $0x8] sm:$0xff] }
   0x4   :  { %152 = vmatprep.subr.bf16.mxu0 %v151_v4  ;;  %22 = vperm.xlu0 %160, %v18_v8  }
   0x5   :  { %154 = vmatpush3.bf16.msra.mxu0 %v151_v4 }
   0x6   :  { %156 = vmatprep.subr.bf16.mxu0 %v155_v7 }
   0x8   :  { %27 = vperm.xlu0 %160, %v19_v9  }
   0x9   :  { %158 = vmatpush3.bf16.msra.mxu0 %v155_v7 }
   0xc   :  { %149 = vmatmul.mubr.msk.f32.vlgmr.msra.gmra.mrb[0].mxu0 %vm41_vm0, %v36_v10 }
  0x83   :  { %v23_v11 = vpop.permute.xlu0 %22 }
  0x84   :  { %31 = vst.msk [vmem:[%s229_s3] sm:$0xff] %vm30_vm1, %v23_v11 }
  0x87   :  { %v28_v12 = vpop.permute.xlu0 %27 }
  0x88   :  { %32 = vst.msk [vmem:[%s229_s3 + $0x8] sm:$0xff] %vm30_vm1, %v28_v12 }
  0x8b   :  { %v33_v16 = vld [vmem:[%s229_s3] sm:$0xff] }
  0x8f   :  { %v34_v13 = vld [vmem:[%s229_s3 + $0x8] sm:$0xff] }
  0xdf   :  { %v150_v14 = vpop.f32.mrb[0].mxu0 }
  0xe0   :  { %v124_v15 = vadd.f32 %v150_v14, %v34_v13  ;;  %v114_v17 = vpop.f32.mrb[1].mxu0 }
  0xe1   :  { %v123_v18 = vadd.f32 %v114_v17, %v33_v16 }
  0xe2   :  { %127 = vst.msk [vmem:[%s229_s3 + $0x8] sm:$0xff] %vm30_vm1, %v124_v15 }
  0xe3   :  { %126 = vst.msk [vmem:[%s229_s3] sm:$0xff] %vm30_vm1, %v123_v18 }

</bundles_post_ra>
